<compile_context>
chip_gen: v5e
topology: v5e:2x2
jax: 0.10.0
libtpu: 0.0.40
codegen_flags: <defaults>
</compile_context>

<pallas_src>
import jax
import jax.numpy as jnp
from jax.experimental import pallas as pl
from jax.experimental.pallas import tpu as pltpu


def _round_up(n, m):
    return ((n + m - 1) // m) * m


def pg_critic_kernel(xT_ref, w1T_ref, b1_ref, w2T_ref, b2_ref, w3_ref, b3_ref, o_ref):
    # Cast the streamed f32 x tile to bf16 on the VPU (rides a spare VALU slot).
    x = xT_ref[...].astype(jnp.bfloat16)                                   # (D, TB)
    # fc1 + ReLU: (H1, D) @ (D, TB) -> (H1, TB), f32 accumulation on the MXU.
    h1 = jnp.dot(w1T_ref[...], x, preferred_element_type=jnp.float32)
    h1 = jnp.maximum(h1 + b1_ref[...], 0.0)                                # (H1, TB)
    # fc2 + ReLU: (H2, H1) @ (H1, TB) -> (H2, TB).
    h2 = jnp.dot(w2T_ref[...], h1.astype(jnp.bfloat16),
                 preferred_element_type=jnp.float32)
    h2 = jnp.maximum(h2 + b2_ref[...], 0.0)                                # (H2, TB)
    # out layer (single unit): VPU multiply + sublane reduce -> lane-dense (1, TB).
    y = jnp.sum(h2 * w3_ref[...], axis=0, keepdims=True) + b3_ref[0]       # (1, TB)
    o_ref[...] = y.astype(o_ref.dtype)


def prepare_params(params):
    """One-time conversion of PyTorch-style params to kernel layout/dtypes.

    `params` holds weights as (in_features, out_features) and biases as (1, out)
    (i.e. y = x @ w + b, equivalent to nn.Linear's y = x @ W.T + b).
    """
    return {
        "w1T": params["w1"].T.astype(jnp.bfloat16),              # (H1, D)
        "b1":  params["b1"].astype(jnp.float32).reshape(-1, 1),  # (H1, 1)
        "w2T": params["w2"].T.astype(jnp.bfloat16),              # (H2, H1)
        "b2":  params["b2"].astype(jnp.float32).reshape(-1, 1),  # (H2, 1)
        "w3":  params["w3"].astype(jnp.float32).reshape(-1, 1),  # (H2, 1)
        "b3":  params["b3"].astype(jnp.float32).reshape(-1),     # (1,) scalar (SMEM)
    }


def _choose_tb(B, tb):
    if B <= 512:
        # Single full-extent tile (block == full array on the lane axis is legal
        # even when not a multiple of 128); avoids padding for small batches.
        return _round_up(B, 8)
    # Lane-dense tiles, and at least 2 grid steps so v7x's two TensorCores can
    # shard the 'parallel' axis and the x-tile DMA overlaps compute.
    return max(128, min(tb, _round_up(pl.cdiv(B, 2), 128)))


def pg_critic_forward(x, kp, tb=1024):
    """x: (B, D_obs) float32. kp: output of prepare_params()."""
    B, D = x.shape
    H1 = kp["w1T"].shape[0]
    H2 = kp["w2T"].shape[0]

    TB = _choose_tb(B, tb)
    Bp = _round_up(B, TB)

    # One-time layout change: batch onto the lane axis. In a real pipeline this
    # transpose fuses into x's producer / is carried upstream.
    xT = x.astype(jnp.float32).T                       # (D, B)
    if Bp != B:
        xT = jnp.pad(xT, ((0, 0), (0, Bp - B)))        # ragged last tile -> zeros

    grid = (Bp // TB,)
    const = lambda i: (0, 0)  # weights / biases: VMEM-resident across grid steps

    out = pl.pallas_call(
        pg_critic_kernel,
        out_shape=jax.ShapeDtypeStruct((1, Bp), jnp.float32),
        grid=grid,
        in_specs=[
            pl.BlockSpec((D, TB), lambda i: (0, i)),    # xT tile (pipelined over batch)
            pl.BlockSpec((H1, D), const),               # w1T
            pl.BlockSpec((H1, 1), const),               # b1 (column, lane-broadcast)
            pl.BlockSpec((H2, H1), const),              # w2T
            pl.BlockSpec((H2, 1), const),               # b2
            pl.BlockSpec((H2, 1), const),               # w3 (column vector)
            pl.BlockSpec(memory_space=pltpu.MemorySpace.SMEM),  # b3 scalar
        ],
        out_specs=pl.BlockSpec((1, TB), lambda i: (0, i)),      # lane-dense store
        compiler_params=pltpu.CompilerParams(
            # parallel batch axis -> megacore sharding on v7x, no-op on v5e/v6e.
            dimension_semantics=("parallel",),
        ),
    )(xT, kp["w1T"], kp["b1"], kp["w2T"], kp["b2"], kp["w3"], kp["b3"])

    return out.reshape(-1, 1)[:B]                       # (B, 1)


def init_params(key, obs_dim, hiddens):
    """Deterministic init mimicking nn.Linear's uniform(-1/sqrt(fan_in), +1/sqrt(fan_in))."""
    dims = [(obs_dim, hiddens[0]), (hiddens[0], hiddens[1]), (hiddens[1], 1)]
    params = {}
    for i, (fan_in, fan_out) in enumerate(dims, start=1):
        key, kw, kb = jax.random.split(key, 3)
        bound = 1.0 / jnp.sqrt(jnp.float32(fan_in))
        params[f"w{i}"] = jax.random.uniform(
            kw, (fan_in, fan_out), jnp.float32, -bound, bound)
        params[f"b{i}"] = jax.random.uniform(
            kb, (1, fan_out), jnp.float32, -bound, bound)
    return params


def reference_forward_f32(x, p):
    h1 = jnp.maximum(x @ p["w1"] + p["b1"], 0.0)
    h2 = jnp.maximum(h1 @ p["w2"] + p["b2"], 0.0)
    return h2 @ p["w3"] + p["b3"]


def reference_forward_mixed(x, p):
    """Mirrors the kernel's mixed precision (bf16 matmul inputs, f32 accumulation)."""
    xb = x.astype(jnp.bfloat16)
    w1b = p["w1"].astype(jnp.bfloat16)
    w2b = p["w2"].astype(jnp.bfloat16)
    h1 = jnp.maximum(
        jnp.dot(xb, w1b, preferred_element_type=jnp.float32) + p["b1"], 0.0)
    h2 = jnp.maximum(
        jnp.dot(h1.astype(jnp.bfloat16), w2b, preferred_element_type=jnp.float32)
        + p["b2"], 0.0)
    return jnp.sum(h2 * p["w3"].reshape(1, -1), axis=-1, keepdims=True) + p["b3"]


if __name__ == "__main__":
    key = jax.random.PRNGKey(0)
    k_in, k_par = jax.random.split(key)

    batch, obs_dim, hiddens = 8, 16, (32, 32)
    x = jax.random.normal(k_in, (batch, obs_dim), jnp.float32)
    params = init_params(k_par, obs_dim, hiddens)
    kparams = prepare_params(params)      # one-time: transposed bf16 weights etc.

    out = pg_critic_forward(x, kparams)
    out = jax.block_until_ready(out)
    assert out.shape == (batch, 1)

    # Tight check against a reference with identical mixed precision.
    ref_mixed = reference_forward_mixed(x, params)
    assert jnp.allclose(out, ref_mixed, atol=1e-4, rtol=1e-4)

    # Loose check against the full-f32 PyTorch-equivalent forward (bf16 rounding).
    ref_f32 = reference_forward_f32(x, params)
    assert jnp.allclose(out, ref_f32, atol=5e-2, rtol=5e-2)

    print("KERNEL_OK")
</pallas_src>

<mosaic_0001>
module attributes {stable_mosaic.version = 11 : i64} {
  func.func @pg_critic_kernel(%arg0: i32, %arg1: memref<16x8xf32, #tpu.memory_space<vmem>>, %arg2: memref<32x16xbf16, #tpu.memory_space<vmem>>, %arg3: memref<32x1xf32, #tpu.memory_space<vmem>>, %arg4: memref<32x32xbf16, #tpu.memory_space<vmem>>, %arg5: memref<32x1xf32, #tpu.memory_space<vmem>>, %arg6: memref<32x1xf32, #tpu.memory_space<vmem>>, %arg7: memref<1xf32, #tpu.memory_space<smem>>, %arg8: memref<1x8xf32, #tpu.memory_space<vmem>>) attributes {dimension_semantics = [#tpu.dimension_semantics<parallel>], iteration_bounds = array<i64: 1>, scalar_prefetch = 0 : i64, scratch_operands = 0 : i64, tpu.core_type = #tpu.core_type<tc>, window_params = [{transform_indices = @transform_0, window_bounds = array<i64: 16, 8>}, {pipeline_mode = #tpu.pipeline_mode<synchronous>, transform_indices = @transform_1, window_bounds = array<i64: 32, 16>}, {pipeline_mode = #tpu.pipeline_mode<synchronous>, transform_indices = @transform_2, window_bounds = array<i64: 32, 1>}, {pipeline_mode = #tpu.pipeline_mode<synchronous>, transform_indices = @transform_3, window_bounds = array<i64: 32, 32>}, {pipeline_mode = #tpu.pipeline_mode<synchronous>, transform_indices = @transform_4, window_bounds = array<i64: 32, 1>}, {pipeline_mode = #tpu.pipeline_mode<synchronous>, transform_indices = @transform_5, window_bounds = array<i64: 32, 1>}, {transform_indices = @transform_6, window_bounds = array<i64: 1>}, {transform_indices = @transform_7, window_bounds = array<i64: 1, 8>}]} {
    %c0 = arith.constant 0 : index
    %c0_0 = arith.constant 0 : index
    %0 = vector.load %arg1[%c0, %c0_0] : memref<16x8xf32, #tpu.memory_space<vmem>>, vector<16x8xf32>
    %1 = arith.truncf %0 : vector<16x8xf32> to vector<16x8xbf16>
    %c0_1 = arith.constant 0 : index
    %c0_2 = arith.constant 0 : index
    %2 = vector.load %arg2[%c0_1, %c0_2] : memref<32x16xbf16, #tpu.memory_space<vmem>>, vector<32x16xbf16>
    %cst = arith.constant dense<0.000000e+00> : vector<32x8xf32>
    %3 = tpu.matmul %2, %1, %cst {dimension_numbers = #tpu.dot_dimension_numbers<[1], [0], [0], [1], [0, 0, 1, 1], [], []>} : vector<32x16xbf16>, vector<16x8xbf16>, vector<32x8xf32> -> vector<32x8xf32>
    %c0_3 = arith.constant 0 : index
    %c0_4 = arith.constant 0 : index
    %4 = vector.load %arg3[%c0_3, %c0_4] : memref<32x1xf32, #tpu.memory_space<vmem>>, vector<32x1xf32>
    %5 = vector.broadcast %4 : vector<32x1xf32> to vector<32x8xf32>
    %6 = arith.addf %3, %5 : vector<32x8xf32>
    %cst_5 = arith.constant 0.000000e+00 : f32
    %7 = vector.broadcast %cst_5 : f32 to vector<32x8xf32>
    %8 = arith.maximumf %6, %7 : vector<32x8xf32>
    %c0_6 = arith.constant 0 : index
    %c0_7 = arith.constant 0 : index
    %9 = vector.load %arg4[%c0_6, %c0_7] : memref<32x32xbf16, #tpu.memory_space<vmem>>, vector<32x32xbf16>
    %10 = arith.truncf %8 : vector<32x8xf32> to vector<32x8xbf16>
    %cst_8 = arith.constant dense<0.000000e+00> : vector<32x8xf32>
    %11 = tpu.matmul %9, %10, %cst_8 {dimension_numbers = #tpu.dot_dimension_numbers<[1], [0], [0], [1], [0, 0, 1, 1], [], []>} : vector<32x32xbf16>, vector<32x8xbf16>, vector<32x8xf32> -> vector<32x8xf32>
    %c0_9 = arith.constant 0 : index
    %c0_10 = arith.constant 0 : index
    %12 = vector.load %arg5[%c0_9, %c0_10] : memref<32x1xf32, #tpu.memory_space<vmem>>, vector<32x1xf32>
    %13 = vector.broadcast %12 : vector<32x1xf32> to vector<32x8xf32>
    %14 = arith.addf %11, %13 : vector<32x8xf32>
    %cst_11 = arith.constant 0.000000e+00 : f32
    %15 = vector.broadcast %cst_11 : f32 to vector<32x8xf32>
    %16 = arith.maximumf %14, %15 : vector<32x8xf32>
    %c0_12 = arith.constant 0 : index
    %c0_13 = arith.constant 0 : index
    %17 = vector.load %arg6[%c0_12, %c0_13] : memref<32x1xf32, #tpu.memory_space<vmem>>, vector<32x1xf32>
    %18 = vector.broadcast %17 : vector<32x1xf32> to vector<32x8xf32>
    %19 = arith.mulf %16, %18 : vector<32x8xf32>
    %cst_14 = arith.constant dense<0.000000e+00> : vector<8xf32>
    %20 = vector.multi_reduction <add>, %19, %cst_14 [0] : vector<32x8xf32> to vector<8xf32>
    %21 = vector.shape_cast %20 : vector<8xf32> to vector<1x8xf32>
    %c0_15 = arith.constant 0 : index
    %22 = memref.load %arg7[%c0_15] : memref<1xf32, #tpu.memory_space<smem>>
    %23 = vector.broadcast %22 : f32 to vector<1x8xf32>
    %24 = arith.addf %21, %23 : vector<1x8xf32>
    %c0_16 = arith.constant 0 : index
    %c0_17 = arith.constant 0 : index
    %25 = vector.load %arg8[%c0_16, %c0_17] : memref<1x8xf32, #tpu.memory_space<vmem>>, vector<1x8xf32>
    tpu.vector_store %arg8[%c0_16, %c0_17], %24 {strides = array<i32>} : memref<1x8xf32, #tpu.memory_space<vmem>>, vector<1x8xf32>,
    return
  }
  func.func @transform_0(%arg0: i32) -> (i32, i32) {
    %c0_i32 = arith.constant 0 : i32
    %c0_i32_0 = arith.constant 0 : i32
    return %c0_i32, %arg0 : i32, i32
  }
  func.func @transform_1(%arg0: i32) -> (i32, i32) {
    %c0_i32 = arith.constant 0 : i32
    %c0_i32_0 = arith.constant 0 : i32
    %c0_i32_1 = arith.constant 0 : i32
    return %c0_i32, %c0_i32_0 : i32, i32
  }
  func.func @transform_2(%arg0: i32) -> (i32, i32) {
    %c0_i32 = arith.constant 0 : i32
    %c0_i32_0 = arith.constant 0 : i32
    %c0_i32_1 = arith.constant 0 : i32
    return %c0_i32, %c0_i32_0 : i32, i32
  }
  func.func @transform_3(%arg0: i32) -> (i32, i32) {
    %c0_i32 = arith.constant 0 : i32
    %c0_i32_0 = arith.constant 0 : i32
    %c0_i32_1 = arith.constant 0 : i32
    return %c0_i32, %c0_i32_0 : i32, i32
  }
  func.func @transform_4(%arg0: i32) -> (i32, i32) {
    %c0_i32 = arith.constant 0 : i32
    %c0_i32_0 = arith.constant 0 : i32
    %c0_i32_1 = arith.constant 0 : i32
    return %c0_i32, %c0_i32_0 : i32, i32
  }
  func.func @transform_5(%arg0: i32) -> (i32, i32) {
    %c0_i32 = arith.constant 0 : i32
    %c0_i32_0 = arith.constant 0 : i32
    %c0_i32_1 = arith.constant 0 : i32
    return %c0_i32, %c0_i32_0 : i32, i32
  }
  func.func @transform_6(%arg0: i32) -> i32 {
    %c0_i32 = arith.constant 0 : i32
    %c0_i32_0 = arith.constant 0 : i32
    return %c0_i32 : i32
  }
  func.func @transform_7(%arg0: i32) -> (i32, i32) {
    %c0_i32 = arith.constant 0 : i32
    %c0_i32_0 = arith.constant 0 : i32
    return %c0_i32, %arg0 : i32, i32
  }
}

</mosaic_0001>

<bundles_post_ra>
// kernel: tpu_custom_call.1
= control target key start
LH: loop header
LB: loop body
LE: loop exit
PB: predicated region body
PF: predicated region fallthrough
CT: control target
= control target key end

     0   :  { %v291_v3 = vmov 0   ;;  %vm70_vm0 = vcmask 130048   ;;  %s393_s0 = inlined_call_operand.vmem [shape: f32[16,8], index: 0, kind: input, shape index: {}]   ;;  %s394_s1 = inlined_call_operand.vmem [shape: bf16[32,16], index: 1, kind: input, shape index: {}]   ;;  %s395_s2 = inlined_call_operand.vmem [shape: f32[32,1], index: 2, kind: input, shape index: {}]   ;;  %s396_s3 = inlined_call_operand.vmem [shape: bf16[32,32], index: 3, kind: input, shape index: {}]   ;;  %s397_s4 = inlined_call_operand.vmem [shape: f32[32,1], index: 4, kind: input, shape index: {}]   ;;  %s398_s5 = inlined_call_operand.vmem [shape: f32[32,1], index: 5, kind: input, shape index: {}]   ;;  %s399_s6 = inlined_call_operand.<no memory space> [shape: f32[1], index: 6, kind: input, shape index: {}]   ;;  %s400_s7 = inlined_call_operand.hbm [shape: f32[1,8], index: 7, kind: output, shape index: {}]  }
   0x1   :  { %v38_v0 = vld [vmem:[%s395_s2 + $0x10] sm:$0xff]  ;;  %v36_v1 = vld [vmem:[%s395_s2] sm:$0xff]  ;;  %262 = vset.pattern.permute.xlu0 %v291_v3  ;;  %263 = vset.pattern.permute.xlu1 %v291_v3  ;;  %v30_v4 = vld [vmem:[%s393_s0 + $0x8] sm:$0xff] }
   0x2   :  { %v29_v2 = vld [vmem:[%s393_s0] sm:$0xff]  ;;  %52 = vperm.xlu0 %262, %v38_v0   ;;  %42 = vperm.xlu1 %263, %v36_v1   ;;  %v254_v6 = vld [vmem:[%s394_s1 + $0x8] sm:$0xff] }
   0x3   :  { %v31_v5 = vpack.c.bf16 %v30_v4, %v29_v2  ;;  %v253_v7 = vld [vmem:[%s394_s1] sm:$0xff]  ;;  %264 = vset.pattern.permute.xlu2 %v291_v3 }
   0x5   :  { %257 = vmatpush.bf16.msra.mxu3 %v31_v5  ;;  %84 = vmatpush.bf16.msra.mxu0 %v31_v5 }
   0x6   :  { %13 = vsyncpa [#allocation4], 0  ;;  %v39_v8 = vld [vmem:[%s395_s2 + $0x18] sm:$0xff]  ;;  %v37_v9 = vld [vmem:[%s395_s2 + $0x8] sm:$0xff]  ;;  %vm140_vm1 = vcmask 261120   ;;  %vm198_vm2 = vcmask 64512  }
   0x7   :  { %v108_v10 = vld [vmem:[%s397_s4 + $0x10] sm:$0xff]  ;;  %v109_v11 = vld [vmem:[%s397_s4 + $0x18] sm:$0xff]  ;;  %v171_v12 = vld [vmem:[%s398_s5 + $0x8] sm:$0xff]  ;;  %s292_s10 = smov [#allocation3]   ;;  %s224_s0 = sshll.u32 %s400_s7, 4  ;;  %vm215_vm3 = vcmask 57344   ;;  %s225_s0 = int_to_ptr.hbm [resolvable:$true] %s224_s0 }
   0x8   :  { %242 = vmatmul.msk.bf16.vlgmr.msra.gmra.mxu3 %vm70_vm0, %v254_v6  ;;  %241 = vmatmul.msk.bf16.vlgmr.msra.gmra.mxu0 %vm70_vm0, %v253_v7  ;;  %v172_v13 = vld [vmem:[%s398_s5 + $0x10] sm:$0xff]  ;;  %v106_v14 = vld [vmem:[%s397_s4] sm:$0xff]  ;;  %v107_v16 = vld [vmem:[%s397_s4 + $0x8] sm:$0xff]  ;;  %s222_s11 = sshll.u32 %s292_s10, 4  ;;  %s223_s11 = int_to_ptr.vmem [resolvable:$true] %s222_s11 }
   0x9   :  { %112 = vperm.xlu2 %264, %v106_v14   ;;  %v170_v20 = vld [vmem:[%s398_s5] sm:$0xff]  ;;  %v173_v34 = vld [vmem:[%s398_s5 + $0x18] sm:$0xff]  ;;  %v256_v37 = vld [vmem:[%s396_s3 + $0x8] sm:$0xff] }
   0xa   :  { %57 = vperm.xlu0 %262, %v39_v8   ;;  %47 = vperm.xlu1 %263, %v37_v9   ;;  %v255_v36 = vld [vmem:[%s396_s3] sm:$0xff] }
  0x11   :  { %117 = vperm.xlu2 %264, %v107_v16  }
  0x12   :  { %122 = vperm.xlu0 %262, %v108_v10   ;;  %127 = vperm.xlu1 %263, %v109_v11   ;;  %v213_v10 = vstv %s399_s6 }
  0x19   :  { %176 = vperm.xlu2 %264, %v170_v20  }
  0x1a   :  { %181 = vperm.xlu0 %262, %v171_v12   ;;  %186 = vperm.xlu1 %263, %v172_v13  }
  0x21   :  { %191 = vperm.xlu2 %264, %v173_v34  }
  0x63   :  { %v113_v38 = vpop.permute.xlu2 %112 }
  0x6b   :  { %v118_v39 = vpop.permute.xlu2 %117 }
  0x73   :  { %v177_v47 = vpop.permute.xlu2 %176 }
  0x74   :  { %v53_v17 = vpop.permute.xlu0 %52  ;;  %v43_v18 = vpop.permute.xlu1 %42 }
  0x7b   :  { %v192_v63 = vpop.permute.xlu2 %191 }
  0x7c   :  { %v58_v22 = vpop.permute.xlu0 %57  ;;  %v48_v24 = vpop.permute.xlu1 %47 }
  0x84   :  { %v123_v41 = vpop.permute.xlu0 %122  ;;  %v128_v43 = vpop.permute.xlu1 %127 }
  0x85   :  { %v86_v15 = vpop.f32.mrf.mxu0 }
  0x86   :  { %v87_v26 = vadd.f32 %v86_v15, %v43_v18 }
  0x88   :  { %v96_v31 = vmax.f32 %v87_v26, 0.0 }
  0x8b   :  { %v91_v19 = vpop.f32.mrf.mxu3 }
  0x8c   :  { %v92_v23 = vadd.f32 %v91_v19, %v53_v17  ;;  %v182_v53 = vpop.permute.xlu0 %181  ;;  %v187_v55 = vpop.permute.xlu1 %186 }
  0x8d   :  { %v88_v21 = vpop.f32.mrf.mxu0 }
  0x8e   :  { %v89_v27 = vadd.f32 %v88_v21, %v48_v24  ;;  %v98_v29 = vmax.f32 %v92_v23, 0.0 }
  0x90   :  { %v97_v32 = vmax.f32 %v89_v27, 0.0 }
  0x92   :  { %v104_v35 = vpack.c.bf16 %v97_v32, %v96_v31 }
  0x93   :  { %v93_v25 = vpop.f32.mrf.mxu3 }
  0x94   :  { %v94_v28 = vadd.f32 %v93_v25, %v58_v22 }
  0x96   :  { %v99_v30 = vmax.f32 %v94_v28, 0.0 }
  0x98   :  { %v105_v33 = vpack.c.bf16 %v99_v30, %v98_v29 }
  0x9a   :  { %153 = vmatpush.bf16.msra.mxu1 %v105_v33  ;;  %258 = vmatpush.bf16.msra.mxu2 %v105_v33 }
  0x9e   :  { %154 = vmatpush.bf16.msra.mxu1 %v104_v35  ;;  %259 = vmatpush.bf16.msra.mxu2 %v104_v35 }
  0xa1   :  { %251 = vmatmul.msk.bf16.vlgmr.msra.gmra.mxu1 %vm140_vm1, %v255_v36  ;;  %252 = vmatmul.msk.bf16.vlgmr.msra.gmra.mxu2 %vm140_vm1, %v256_v37 }
 0x11e   :  { %v156_v40 = vpop.f32.mrf.mxu1 }
 0x11f   :  { %v157_v42 = vadd.f32 %v156_v40, %v113_v38 }
 0x121   :  { %v166_v45 = vmax.f32 %v157_v42, 0.0 }
 0x123   :  { %v194_v50 = vmul.f32 %v177_v47, %v166_v45 }
 0x124   :  { %v161_v44 = vpop.f32.mrf.mxu2 }
 0x125   :  { %v162_v46 = vadd.f32 %v161_v44, %v123_v41  ;;  %v199_v57 = vsel %vm198_vm2, %v194_v50, 0.0 }
 0x126   :  { %v158_v48 = vpop.f32.mrf.mxu1 }
 0x127   :  { %v159_v49 = vadd.f32 %v158_v48, %v118_v39  ;;  %v168_v51 = vmax.f32 %v162_v46, 0.0 }
 0x129   :  { %v167_v52 = vmax.f32 %v159_v49, 0.0  ;;  %v196_v58 = vmul.f32 %v187_v55, %v168_v51 }
 0x12b   :  { %v195_v54 = vmul.f32 %v182_v53, %v167_v52  ;;  %v202_v0 = vsel %vm198_vm2, %v196_v58, 0.0 }
 0x12c   :  { %v163_v56 = vpop.f32.mrf.mxu2 }
 0x12d   :  { %v200_v59 = vsel %vm198_vm2, %v195_v54, 0.0  ;;  %v164_v60 = vadd.f32 %v163_v56, %v128_v43 }
 0x12e   :  { %v201_v61 = vadd.f32 %v200_v59, %v199_v57 }
 0x12f   :  { %v169_v62 = vmax.f32 %v164_v60, 0.0 }
 0x130   :  { %v203_v2 = vadd.f32 %v202_v0, %v201_v61 }
 0x131   :  { %v197_v1 = vmul.f32 %v192_v63, %v169_v62 }
 0x133   :  { %v204_v3 = vsel %vm198_vm2, %v197_v1, 0.0 }
 0x134   :  { %v205_v4 = vadd.f32 %v204_v3, %v203_v2 }
 0x136   :  { %v206_v5 = vrot.slane %v205_v4, 4 }
 0x138   :  { %v207_v6 = vadd.f32 %v206_v5, %v205_v4 }
 0x13a   :  { %v208_v7 = vrot.slane %v207_v6, 2 }
 0x13c   :  { %v209_v8 = vadd.f32 %v208_v7, %v207_v6 }
 0x13e   :  { %v210_v9 = vrot.slane %v209_v8, 1 }
 0x140   :  { %v211_v11 = vadd.f32 %v210_v9, %v209_v8 }
 0x142   :  { %v214_v12 = vadd.f32 %v213_v10, %v211_v11 }
 0x144   :  { %216 = vst.msk [vmem:[#allocation3] sm:$0x1] %vm215_vm3, %v214_v12 }
 0x145   :  { %227 = dma.vmem_to_hbm [thread:$0]  %s223_s11, 16, %s225_s0, [#allocation4]  }
 0x146   :  { %289 = dma.done.wait [#allocation4], 16  }
 0x147   :  { %290 = vsyncadd [#allocation4], 4294967280 }
 0x148   :  { %232 = vsyncpa [#allocation4], 1 }

</bundles_post_ra>
